<compile_context>
chip_gen: v5e
topology: v5e:2x2
jax: 0.10.0
libtpu: 0.0.40
codegen_flags: <defaults>
</compile_context>

<pallas_src>
import functools

import numpy as np
import jax
import jax.numpy as jnp
from jax.experimental import pallas as pl
from jax.experimental.pallas import tpu as pltpu

INPUT_SIZE = 7
HIDDEN_SIZE = 1000
NUM_CLASSES = 3
LEAKY_SLOPE = 0.01  # nn.LeakyReLU default negative_slope

# Padded (TPU-friendly) dimensions.
IN_PAD = 8       # K=7 -> 8 (sublane multiple)
HID_PAD = 1024   # 1000 -> 8 * 128 lanes
OUT_PAD = 128    # 3 -> 128 (lane-dense output slab)

# Combined negative slope of 6 LeakyReLU passes, via 6 repeated f32 multiplies
# (matches applying 0.01 six times as closely as possible).
_SLOPE6 = np.float32(1.0)
for _ in range(6):
    _SLOPE6 = np.float32(_SLOPE6 * np.float32(LEAKY_SLOPE))


def _round_up(n, m):
    return ((n + m - 1) // m) * m


def _mlp_kernel(x_ref, w1_ref, b1_ref, w2_ref, b2_ref, o_ref):
    # x.type(torch.float32)
    x = x_ref[...].astype(jnp.float32)

    # out = self.l1(x)
    h = jnp.dot(x, w1_ref[...], preferred_element_type=jnp.float32) + b1_ref[...]

    # out = self.lrelu(out)  applied 6x in the PyTorch forward; collapsed to a
    # single select (positives unchanged, negatives scaled by 0.01^6).
    h = jnp.where(h >= 0.0, h, jnp.float32(_SLOPE6) * h)

    # out = self.l2(out)
    o_ref[...] = (
        jnp.dot(h, w2_ref[...], preferred_element_type=jnp.float32) + b2_ref[...]
    ).astype(o_ref.dtype)


def prepare_params(w1, b1, w2, b2):
    """One-time preprocessing: transpose to (in, out) and zero-pad to
    TPU-friendly shapes.  PyTorch layouts: w1 (HIDDEN, INPUT), b1 (HIDDEN,),
    w2 (NUM_CLASSES, HIDDEN), b2 (NUM_CLASSES,)."""
    w1 = jnp.asarray(w1, jnp.float32)
    b1 = jnp.asarray(b1, jnp.float32)
    w2 = jnp.asarray(w2, jnp.float32)
    b2 = jnp.asarray(b2, jnp.float32)

    w1p = jnp.zeros((IN_PAD, HID_PAD), jnp.float32)
    w1p = w1p.at[:INPUT_SIZE, :HIDDEN_SIZE].set(w1.T)          # (8, 1024)
    b1p = jnp.zeros((1, HID_PAD), jnp.float32)
    b1p = b1p.at[:, :HIDDEN_SIZE].set(b1[None, :])             # (1, 1024)
    w2p = jnp.zeros((HID_PAD, OUT_PAD), jnp.float32)
    w2p = w2p.at[:HIDDEN_SIZE, :NUM_CLASSES].set(w2.T)         # (1024, 128)
    b2p = jnp.zeros((1, OUT_PAD), jnp.float32)
    b2p = b2p.at[:, :NUM_CLASSES].set(b2[None, :])             # (1, 128)
    return w1p, b1p, w2p, b2p


@functools.partial(jax.jit, static_argnames=("block_b",))
def neural_net_forward(x, w1p, b1p, w2p, b2p, *, block_b=512):
    """x: (B, INPUT_SIZE) any float/int dtype. Params from prepare_params().
    Returns (B, NUM_CLASSES) float32."""
    B = x.shape[0]
    tb = min(block_b, _round_up(max(B, 1), 8))   # batch tile (multiple of 8)
    b_pad = _round_up(max(B, 1), tb)

    # Zero-pad batch -> multiple of tb and features 7 -> 8.
    xp = jnp.zeros((b_pad, IN_PAD), jnp.float32)
    xp = xp.at[:B, :INPUT_SIZE].set(x.astype(jnp.float32))

    out = pl.pallas_call(
        _mlp_kernel,
        out_shape=jax.ShapeDtypeStruct((b_pad, OUT_PAD), jnp.float32),
        grid=(b_pad // tb,),
        in_specs=[
            pl.BlockSpec((tb, IN_PAD), lambda i: (i, 0)),       # x tile
            pl.BlockSpec((IN_PAD, HID_PAD), lambda i: (0, 0)),  # W1 (resident)
            pl.BlockSpec((1, HID_PAD), lambda i: (0, 0)),       # b1
            pl.BlockSpec((HID_PAD, OUT_PAD), lambda i: (0, 0)),  # W2
            pl.BlockSpec((1, OUT_PAD), lambda i: (0, 0)),       # b2
        ],
        out_specs=pl.BlockSpec((tb, OUT_PAD), lambda i: (i, 0)),
        compiler_params=pltpu.CompilerParams(
            dimension_semantics=("parallel",),
        ),
    )(xp, w1p, b1p, w2p, b2p)

    return out[:B, :NUM_CLASSES]


def _reference_forward(x, w1, b1, w2, b2):
    """Pure-JAX reference matching the PyTorch forward exactly (6 LeakyReLU)."""
    h = jnp.asarray(x, jnp.float32) @ jnp.asarray(w1, jnp.float32).T + b1
    for _ in range(6):
        h = jnp.where(h >= 0.0, h, LEAKY_SLOPE * h)
    return h @ jnp.asarray(w2, jnp.float32).T + b2


if __name__ == "__main__":
    key = jax.random.PRNGKey(0)
    k_x, k_w1, k_b1, k_w2, k_b2 = jax.random.split(key, 5)

    batch = 8
    x = jax.random.normal(k_x, (batch, INPUT_SIZE), dtype=jnp.float32)

    # Deterministic parameter init (uniform, PyTorch-Linear-like bounds).
    bound1 = 1.0 / (INPUT_SIZE ** 0.5)
    w1 = jax.random.uniform(k_w1, (HIDDEN_SIZE, INPUT_SIZE), jnp.float32,
                            -bound1, bound1)
    b1 = jax.random.uniform(k_b1, (HIDDEN_SIZE,), jnp.float32, -bound1, bound1)
    bound2 = 1.0 / (HIDDEN_SIZE ** 0.5)
    w2 = jax.random.uniform(k_w2, (NUM_CLASSES, HIDDEN_SIZE), jnp.float32,
                            -bound2, bound2)
    b2 = jax.random.uniform(k_b2, (NUM_CLASSES,), jnp.float32, -bound2, bound2)

    # One-time parameter preprocessing (hoisted out of the forward path).
    params = prepare_params(w1, b1, w2, b2)
    params = jax.block_until_ready(params)

    out = neural_net_forward(x, *params)
    out = jax.block_until_ready(out)

    ref = _reference_forward(x, w1, b1, w2, b2)
    assert out.shape == (batch, NUM_CLASSES), out.shape
    assert jnp.allclose(out, ref, atol=1e-4, rtol=1e-4), "mismatch vs reference"

    print("KERNEL_OK")
</pallas_src>

<mosaic_0001>
module attributes {stable_mosaic.version = 11 : i64} {
  func.func @_mlp_kernel(%arg0: i32, %arg1: memref<8x8xf32, #tpu.memory_space<vmem>>, %arg2: memref<8x1024xf32, #tpu.memory_space<vmem>>, %arg3: memref<1x1024xf32, #tpu.memory_space<vmem>>, %arg4: memref<1024x128xf32, #tpu.memory_space<vmem>>, %arg5: memref<1x128xf32, #tpu.memory_space<vmem>>, %arg6: memref<8x128xf32, #tpu.memory_space<vmem>>) attributes {dimension_semantics = [#tpu.dimension_semantics<parallel>], iteration_bounds = array<i64: 1>, scalar_prefetch = 0 : i64, scratch_operands = 0 : i64, tpu.core_type = #tpu.core_type<tc>, window_params = [{transform_indices = @transform_0, window_bounds = array<i64: 8, 8>}, {pipeline_mode = #tpu.pipeline_mode<synchronous>, transform_indices = @transform_1, window_bounds = array<i64: 8, 1024>}, {pipeline_mode = #tpu.pipeline_mode<synchronous>, transform_indices = @transform_2, window_bounds = array<i64: 1, 1024>}, {pipeline_mode = #tpu.pipeline_mode<synchronous>, transform_indices = @transform_3, window_bounds = array<i64: 1024, 128>}, {pipeline_mode = #tpu.pipeline_mode<synchronous>, transform_indices = @transform_4, window_bounds = array<i64: 1, 128>}, {transform_indices = @transform_5, window_bounds = array<i64: 8, 128>}]} {
    %c0 = arith.constant 0 : index
    %c0_0 = arith.constant 0 : index
    %0 = vector.load %arg1[%c0, %c0_0] : memref<8x8xf32, #tpu.memory_space<vmem>>, vector<8x8xf32>
    %c0_1 = arith.constant 0 : index
    %c0_2 = arith.constant 0 : index
    %1 = vector.load %arg2[%c0_1, %c0_2] : memref<8x1024xf32, #tpu.memory_space<vmem>>, vector<8x1024xf32>
    %cst = arith.constant dense<0.000000e+00> : vector<8x1024xf32>
    %2 = tpu.matmul %0, %1, %cst {dimension_numbers = #tpu.dot_dimension_numbers<[1], [0], [0], [1], [0, 0, 1, 1], [], []>} : vector<8x8xf32>, vector<8x1024xf32>, vector<8x1024xf32> -> vector<8x1024xf32>
    %c0_3 = arith.constant 0 : index
    %c0_4 = arith.constant 0 : index
    %3 = vector.load %arg3[%c0_3, %c0_4] : memref<1x1024xf32, #tpu.memory_space<vmem>>, vector<1x1024xf32>
    %4 = vector.broadcast %3 : vector<1x1024xf32> to vector<8x1024xf32>
    %5 = arith.addf %2, %4 : vector<8x1024xf32>
    %cst_5 = arith.constant 0.000000e+00 : f32
    %6 = vector.broadcast %cst_5 : f32 to vector<8x1024xf32>
    %7 = arith.cmpf oge, %5, %6 : vector<8x1024xf32>
    %cst_6 = arith.constant 9.99999887E-13 : f32
    %8 = vector.broadcast %cst_6 : f32 to vector<8x1024xf32>
    %9 = arith.mulf %8, %5 : vector<8x1024xf32>
    %10 = arith.select %7, %5, %9 : vector<8x1024xi1>, vector<8x1024xf32>
    %c0_7 = arith.constant 0 : index
    %c0_8 = arith.constant 0 : index
    %11 = vector.load %arg4[%c0_7, %c0_8] : memref<1024x128xf32, #tpu.memory_space<vmem>>, vector<1024x128xf32>
    %cst_9 = arith.constant dense<0.000000e+00> : vector<8x128xf32>
    %12 = tpu.matmul %10, %11, %cst_9 {dimension_numbers = #tpu.dot_dimension_numbers<[1], [0], [0], [1], [0, 0, 1, 1], [], []>} : vector<8x1024xf32>, vector<1024x128xf32>, vector<8x128xf32> -> vector<8x128xf32>
    %c0_10 = arith.constant 0 : index
    %c0_11 = arith.constant 0 : index
    %13 = vector.load %arg5[%c0_10, %c0_11] : memref<1x128xf32, #tpu.memory_space<vmem>>, vector<1x128xf32>
    %14 = vector.broadcast %13 : vector<1x128xf32> to vector<8x128xf32>
    %15 = arith.addf %12, %14 : vector<8x128xf32>
    %c0_12 = arith.constant 0 : index
    %c0_13 = arith.constant 0 : index
    %16 = vector.load %arg6[%c0_12, %c0_13] : memref<8x128xf32, #tpu.memory_space<vmem>>, vector<8x128xf32>
    tpu.vector_store %arg6[%c0_12, %c0_13], %15 {strides = array<i32>} : memref<8x128xf32, #tpu.memory_space<vmem>>, vector<8x128xf32>,
    return
  }
  func.func @transform_0(%arg0: i32) -> (i32, i32) {
    %c0_i32 = arith.constant 0 : i32
    %c0_i32_0 = arith.constant 0 : i32
    return %arg0, %c0_i32 : i32, i32
  }
  func.func @transform_1(%arg0: i32) -> (i32, i32) {
    %c0_i32 = arith.constant 0 : i32
    %c0_i32_0 = arith.constant 0 : i32
    %c0_i32_1 = arith.constant 0 : i32
    return %c0_i32, %c0_i32_0 : i32, i32
  }
  func.func @transform_2(%arg0: i32) -> (i32, i32) {
    %c0_i32 = arith.constant 0 : i32
    %c0_i32_0 = arith.constant 0 : i32
    %c0_i32_1 = arith.constant 0 : i32
    return %c0_i32, %c0_i32_0 : i32, i32
  }
  func.func @transform_3(%arg0: i32) -> (i32, i32) {
    %c0_i32 = arith.constant 0 : i32
    %c0_i32_0 = arith.constant 0 : i32
    %c0_i32_1 = arith.constant 0 : i32
    return %c0_i32, %c0_i32_0 : i32, i32
  }
  func.func @transform_4(%arg0: i32) -> (i32, i32) {
    %c0_i32 = arith.constant 0 : i32
    %c0_i32_0 = arith.constant 0 : i32
    %c0_i32_1 = arith.constant 0 : i32
    return %c0_i32, %c0_i32_0 : i32, i32
  }
  func.func @transform_5(%arg0: i32) -> (i32, i32) {
    %c0_i32 = arith.constant 0 : i32
    %c0_i32_0 = arith.constant 0 : i32
    return %arg0, %c0_i32 : i32, i32
  }
}

</mosaic_0001>

<bundles_post_ra>
// kernel: neural_net_forward.1
= control target key start
LH: loop header
LB: loop body
LE: loop exit
PB: predicated region body
PF: predicated region fallthrough
CT: control target
= control target key end

     0   :  { %10 = vsyncpa [#allocation3], 0  ;;  %s689_s0 = inlined_call_operand.vmem [shape: f32[8,8], index: 0, kind: input, shape index: {}]   ;;  %s690_s1 = inlined_call_operand.hbm [shape: f32[8,1024], index: 1, kind: input, shape index: {}]   ;;  %s691_s2 = inlined_call_operand.vmem [shape: f32[1,1024], index: 2, kind: input, shape index: {}]   ;;  %s692_s3 = inlined_call_operand.hbm [shape: f32[1024,128], index: 3, kind: input, shape index: {}]   ;;  %s693_s4 = inlined_call_operand.vmem [shape: f32[1,128], index: 4, kind: input, shape index: {}]   ;;  %s694_s5 = inlined_call_operand.vmem [shape: f32[8,128], index: 5, kind: output, shape index: {}]  }
   0x1   :  { %s19_s20 = sshll.u32 %s690_s1, 4  ;;  %s20_s20 = int_to_ptr.hbm [resolvable:$true] %s19_s20 }
   0x2   :  { %11 = vsyncpa [#allocation5], 0  ;;  %s629_s21 = smov [#allocation2]   ;;  %s31_s25 = sshll.u32 %s692_s3, 4  ;;  %s32_s25 = int_to_ptr.hbm [resolvable:$true] %s31_s25 }
   0x3   :  { %s21_s22 = sshll.u32 %s629_s21, 4  ;;  %s630_s26 = smov [#allocation4]   ;;  %s22_s22 = int_to_ptr.vmem [resolvable:$true] %s21_s22 }
   0x4   :  { %24 = dma.hbm_to_vmem [thread:$0]  %s20_s20, 1024, %s22_s22, [#allocation3]  }
   0x5   :  { %s33_s27 = sshll.u32 %s630_s26, 4  ;;  %s631_s28 = smov 128   ;;  %s34_s27 = int_to_ptr.vmem [resolvable:$true] %s33_s27 }
   0x6   :  { %s632_s29 = smov 8  }
   0x7   :  { %39 = dma.hbm_to_vmem [thread:$0]  %s32_s25, 16384, %s34_s27, [#allocation5], %s631_s28, %s631_s28, %s632_s29  }
   0x8   :  { %625 = dma.done.wait [#allocation3], 1024  }
   0x9   :  { %626 = vsyncadd [#allocation3], 4294966272 }
   0xa   :  { %627 = dma.done.wait [#allocation5], 16384  }
   0xb   :  { %628 = vsyncadd [#allocation5], 4294950912  ;;  %vm77_vm0 = vcmask 64512   ;;  %v53_v0 = vld [vmem:[#allocation2 + $0x10] sm:$0xff]  ;;  %v54_v1 = vld [vmem:[#allocation2 + $0x18] sm:$0xff] }
   0xc   :  { %v50_v2 = vld [vmem:[%s689_s0] sm:$0xff]  ;;  %136 = vmatpush.msra.mxu2 %v53_v0  ;;  %156 = vmatpush.msra.mxu3 %v54_v1  ;;  %v57_v3 = vld [vmem:[#allocation2 + $0x30] sm:$0xff]  ;;  %v58_v4 = vld [vmem:[#allocation2 + $0x38] sm:$0xff] }
   0xd   :  { %v51_v5 = vld [vmem:[#allocation2] sm:$0xff]  ;;  %566 = vmatmul.msk.f32.vlgmr.msra.gmra.mxu2 %vm77_vm0, %v50_v2  ;;  %567 = vmatmul.msk.f32.vlgmr.msra.gmra.mxu3 %vm77_vm0, %v50_v2  ;;  %v52_v6 = vld [vmem:[#allocation2 + $0x8] sm:$0xff]  ;;  %v280_v9 = vld [vmem:[#allocation4 + $0x78] sm:$0xff] }
   0xe   :  { %216 = vmatpush.msrb.mxu2 %v57_v3  ;;  %236 = vmatpush.msrb.mxu3 %v58_v4  ;;  %v55_v7 = vld [vmem:[#allocation2 + $0x20] sm:$0xff]  ;;  %v56_v8 = vld [vmem:[#allocation2 + $0x28] sm:$0xff]  ;;  %v312_v10 = vld [vmem:[#allocation4 + $0x178] sm:$0xff] }
   0xf   :  { %96 = vmatpush.msra.mxu0 %v51_v5  ;;  %116 = vmatpush.msra.mxu1 %v52_v6  ;;  %v328_v11 = vld [vmem:[#allocation4 + $0x1f8] sm:$0xff]  ;;  %v279_v13 = vld [vmem:[#allocation4 + $0x70] sm:$0xff]  ;;  %v278_v16 = vld [vmem:[#allocation4 + $0x68] sm:$0xff] }
  0x10   :  { %564 = vmatmul.msk.f32.vlgmr.msra.gmra.mxu0 %vm77_vm0, %v50_v2  ;;  %565 = vmatmul.msk.f32.vlgmr.msra.gmra.mxu1 %vm77_vm0, %v50_v2  ;;  %v296_v12 = vld [vmem:[#allocation4 + $0xf8] sm:$0xff]  ;;  %v311_v14 = vld [vmem:[#allocation4 + $0x170] sm:$0xff]  ;;  %v310_v18 = vld [vmem:[#allocation4 + $0x168] sm:$0xff] }
  0x11   :  { %176 = vmatpush.msrb.mxu0 %v55_v7  ;;  %196 = vmatpush.msrb.mxu1 %v56_v8  ;;  %v327_v15 = vld [vmem:[#allocation4 + $0x1f0] sm:$0xff]  ;;  %v326_v19 = vld [vmem:[#allocation4 + $0x1e8] sm:$0xff]  ;;  %v277_v20 = vld [vmem:[#allocation4 + $0x60] sm:$0xff] }
  0x12   :  { %437 = vmatpush.msra.mxu2 %v312_v10  ;;  %457 = vmatpush.msra.mxu3 %v328_v11  ;;  %v295_v17 = vld [vmem:[#allocation4 + $0xf0] sm:$0xff]  ;;  %v294_v21 = vld [vmem:[#allocation4 + $0xe8] sm:$0xff]  ;;  %v309_v22 = vld [vmem:[#allocation4 + $0x160] sm:$0xff] }
  0x13   :  { %397 = vmatpush.msra.mxu0 %v280_v9  ;;  %417 = vmatpush.msra.mxu1 %v296_v12  ;;  %v325_v23 = vld [vmem:[#allocation4 + $0x1e0] sm:$0xff]  ;;  %v276_v24 = vld [vmem:[#allocation4 + $0x58] sm:$0xff]  ;;  %v275_v28 = vld [vmem:[#allocation4 + $0x50] sm:$0xff] }
  0x14   :  { %438 = vmatpush.msra.mxu2 %v311_v14  ;;  %458 = vmatpush.msra.mxu3 %v327_v15  ;;  %v293_v25 = vld [vmem:[#allocation4 + $0xe0] sm:$0xff]  ;;  %v308_v26 = vld [vmem:[#allocation4 + $0x158] sm:$0xff]  ;;  %v307_v30 = vld [vmem:[#allocation4 + $0x150] sm:$0xff] }
  0x15   :  { %398 = vmatpush.msra.mxu0 %v279_v13  ;;  %570 = vmatmul.msk.f32.vlgmr.msrb.gmra.mxu2 %vm77_vm0, %v50_v2  ;;  %v324_v27 = vld [vmem:[#allocation4 + $0x1d8] sm:$0xff]  ;;  %v323_v31 = vld [vmem:[#allocation4 + $0x1d0] sm:$0xff]  ;;  %v274_v32 = vld [vmem:[#allocation4 + $0x48] sm:$0xff] }
  0x16   :  { %571 = vmatmul.msk.f32.vlgmr.msrb.gmra.mxu3 %vm77_vm0, %v50_v2  ;;  %418 = vmatpush.msra.mxu1 %v295_v17  ;;  %v292_v29 = vld [vmem:[#allocation4 + $0xd8] sm:$0xff]  ;;  %v291_v33 = vld [vmem:[#allocation4 + $0xd0] sm:$0xff]  ;;  %v306_v34 = vld [vmem:[#allocation4 + $0x148] sm:$0xff] }
  0x17   :  { %399 = vmatpush.msra.mxu0 %v278_v16  ;;  %439 = vmatpush.msra.mxu2 %v310_v18  ;;  %v322_v35 = vld [vmem:[#allocation4 + $0x1c8] sm:$0xff]  ;;  %v273_v36 = vld [vmem:[#allocation4 + $0x40] sm:$0xff]  ;;  %v272_v40 = vld [vmem:[#allocation4 + $0x38] sm:$0xff] }
  0x18   :  { %568 = vmatmul.msk.f32.vlgmr.msrb.gmra.mxu0 %vm77_vm0, %v50_v2  ;;  %569 = vmatmul.msk.f32.vlgmr.msrb.gmra.mxu1 %vm77_vm0, %v50_v2  ;;  %v290_v37 = vld [vmem:[#allocation4 + $0xc8] sm:$0xff]  ;;  %v305_v38 = vld [vmem:[#allocation4 + $0x140] sm:$0xff]  ;;  %v304_v42 = vld [vmem:[#allocation4 + $0x138] sm:$0xff] }
  0x19   :  { %459 = vmatpush.msra.mxu3 %v326_v19  ;;  %400 = vmatpush.msra.mxu0 %v277_v20  ;;  %v321_v39 = vld [vmem:[#allocation4 + $0x1c0] sm:$0xff]  ;;  %v320_v43 = vld [vmem:[#allocation4 + $0x1b8] sm:$0xff]  ;;  %v271_v44 = vld [vmem:[#allocation4 + $0x30] sm:$0xff] }
  0x1a   :  { %419 = vmatpush.msra.mxu1 %v294_v21  ;;  %440 = vmatpush.msra.mxu2 %v309_v22  ;;  %v289_v41 = vld [vmem:[#allocation4 + $0xc0] sm:$0xff]  ;;  %v288_v45 = vld [vmem:[#allocation4 + $0xb8] sm:$0xff]  ;;  %v303_v46 = vld [vmem:[#allocation4 + $0x130] sm:$0xff] }
  0x1b   :  { %460 = vmatpush.msra.mxu3 %v325_v23  ;;  %401 = vmatpush.msra.mxu0 %v276_v24  ;;  %v319_v47 = vld [vmem:[#allocation4 + $0x1b0] sm:$0xff]  ;;  %v270_v48 = vld [vmem:[#allocation4 + $0x28] sm:$0xff]  ;;  %v269_v52 = vld [vmem:[#allocation4 + $0x20] sm:$0xff] }
  0x1c   :  { %420 = vmatpush.msra.mxu1 %v293_v25  ;;  %441 = vmatpush.msra.mxu2 %v308_v26  ;;  %v287_v49 = vld [vmem:[#allocation4 + $0xb0] sm:$0xff]  ;;  %v302_v50 = vld [vmem:[#allocation4 + $0x128] sm:$0xff]  ;;  %v301_v54 = vld [vmem:[#allocation4 + $0x120] sm:$0xff] }
  0x1d   :  { %461 = vmatpush.msra.mxu3 %v324_v27  ;;  %402 = vmatpush.msra.mxu0 %v275_v28  ;;  %v318_v51 = vld [vmem:[#allocation4 + $0x1a8] sm:$0xff]  ;;  %v317_v55 = vld [vmem:[#allocation4 + $0x1a0] sm:$0xff]  ;;  %v268_v56 = vld [vmem:[#allocation4 + $0x18] sm:$0xff] }
  0x1e   :  { %421 = vmatpush.msra.mxu1 %v292_v29  ;;  %442 = vmatpush.msra.mxu2 %v307_v30  ;;  %v286_v53 = vld [vmem:[#allocation4 + $0xa8] sm:$0xff]  ;;  %v285_v57 = vld [vmem:[#allocation4 + $0xa0] sm:$0xff]  ;;  %v300_v58 = vld [vmem:[#allocation4 + $0x118] sm:$0xff] }
  0x1f   :  { %462 = vmatpush.msra.mxu3 %v323_v31  ;;  %403 = vmatpush.msra.mxu0 %v274_v32  ;;  %v316_v59 = vld [vmem:[#allocation4 + $0x198] sm:$0xff]  ;;  %v267_v60 = vld [vmem:[#allocation4 + $0x10] sm:$0xff]  ;;  %v266_v0 = vld [vmem:[#allocation4 + $0x8] sm:$0xff] }
  0x20   :  { %422 = vmatpush.msra.mxu1 %v291_v33  ;;  %443 = vmatpush.msra.mxu2 %v306_v34  ;;  %v284_v61 = vld [vmem:[#allocation4 + $0x98] sm:$0xff]  ;;  %v299_v62 = vld [vmem:[#allocation4 + $0x110] sm:$0xff]  ;;  %v298_v2 = vld [vmem:[#allocation4 + $0x108] sm:$0xff] }
  0x21   :  { %463 = vmatpush.msra.mxu3 %v322_v35  ;;  %404 = vmatpush.msra.mxu0 %v273_v36  ;;  %v315_v63 = vld [vmem:[#allocation4 + $0x190] sm:$0xff]  ;;  %v314_v3 = vld [vmem:[#allocation4 + $0x188] sm:$0xff]  ;;  %v265_v4 = vld [vmem:[#allocation4] sm:$0xff] }
  0x22   :  { %423 = vmatpush.msra.mxu1 %v290_v37  ;;  %444 = vmatpush.msra.mxu2 %v305_v38  ;;  %v283_v1 = vld [vmem:[#allocation4 + $0x90] sm:$0xff]  ;;  %v282_v5 = vld [vmem:[#allocation4 + $0x88] sm:$0xff]  ;;  %v297_v6 = vld [vmem:[#allocation4 + $0x100] sm:$0xff] }
  0x23   :  { %464 = vmatpush.msra.mxu3 %v321_v39  ;;  %405 = vmatpush.msra.mxu0 %v272_v40  ;;  %v313_v7 = vld [vmem:[#allocation4 + $0x180] sm:$0xff]  ;;  %v344_v8 = vld [vmem:[#allocation4 + $0x278] sm:$0xff]  ;;  %v343_v12 = vld [vmem:[#allocation4 + $0x270] sm:$0xff] }
  0x24   :  { %424 = vmatpush.msra.mxu1 %v289_v41  ;;  %445 = vmatpush.msra.mxu2 %v304_v42  ;;  %v376_v9 = vld [vmem:[#allocation4 + $0x378] sm:$0xff]  ;;  %v281_v11 = vld [vmem:[#allocation4 + $0x80] sm:$0xff]  ;;  %v375_v14 = vld [vmem:[#allocation4 + $0x370] sm:$0xff] }
  0x25   :  { %465 = vmatpush.msra.mxu3 %v320_v43  ;;  %406 = vmatpush.msra.mxu0 %v271_v44  ;;  %v392_v10 = vld [vmem:[#allocation4 + $0x3f8] sm:$0xff]  ;;  %v391_v15 = vld [vmem:[#allocation4 + $0x3f0] sm:$0xff]  ;;  %v342_v16 = vld [vmem:[#allocation4 + $0x268] sm:$0xff] }
  0x26   :  { %425 = vmatpush.msra.mxu1 %v288_v45  ;;  %446 = vmatpush.msra.mxu2 %v303_v46  ;;  %v360_v13 = vld [vmem:[#allocation4 + $0x2f8] sm:$0xff]  ;;  %v359_v17 = vld [vmem:[#allocation4 + $0x2f0] sm:$0xff]  ;;  %v374_v18 = vld [vmem:[#allocation4 + $0x368] sm:$0xff] }
  0x27   :  { %466 = vmatpush.msra.mxu3 %v319_v47  ;;  %407 = vmatpush.msra.mxu0 %v270_v48  ;;  %v390_v19 = vld [vmem:[#allocation4 + $0x3e8] sm:$0xff]  ;;  %v341_v20 = vld [vmem:[#allocation4 + $0x260] sm:$0xff]  ;;  %v340_v24 = vld [vmem:[#allocation4 + $0x258] sm:$0xff] }
  0x28   :  { %426 = vmatpush.msra.mxu1 %v287_v49  ;;  %447 = vmatpush.msra.mxu2 %v302_v50  ;;  %v358_v21 = vld [vmem:[#allocation4 + $0x2e8] sm:$0xff]  ;;  %v373_v22 = vld [vmem:[#allocation4 + $0x360] sm:$0xff]  ;;  %v372_v26 = vld [vmem:[#allocation4 + $0x358] sm:$0xff] }
  0x29   :  { %467 = vmatpush.msra.mxu3 %v318_v51  ;;  %408 = vmatpush.msra.mxu0 %v269_v52  ;;  %v389_v23 = vld [vmem:[#allocation4 + $0x3e0] sm:$0xff]  ;;  %v388_v27 = vld [vmem:[#allocation4 + $0x3d8] sm:$0xff]  ;;  %v339_v28 = vld [vmem:[#allocation4 + $0x250] sm:$0xff] }
  0x2a   :  { %427 = vmatpush.msra.mxu1 %v286_v53  ;;  %448 = vmatpush.msra.mxu2 %v301_v54  ;;  %v357_v25 = vld [vmem:[#allocation4 + $0x2e0] sm:$0xff]  ;;  %v356_v29 = vld [vmem:[#allocation4 + $0x2d8] sm:$0xff]  ;;  %v371_v30 = vld [vmem:[#allocation4 + $0x350] sm:$0xff] }
  0x2b   :  { %468 = vmatpush.msra.mxu3 %v317_v55  ;;  %409 = vmatpush.msra.mxu0 %v268_v56  ;;  %v387_v31 = vld [vmem:[#allocation4 + $0x3d0] sm:$0xff]  ;;  %v338_v32 = vld [vmem:[#allocation4 + $0x248] sm:$0xff]  ;;  %v337_v36 = vld [vmem:[#allocation4 + $0x240] sm:$0xff] }
  0x2c   :  { %428 = vmatpush.msra.mxu1 %v285_v57  ;;  %449 = vmatpush.msra.mxu2 %v300_v58  ;;  %v355_v33 = vld [vmem:[#allocation4 + $0x2d0] sm:$0xff]  ;;  %v370_v34 = vld [vmem:[#allocation4 + $0x348] sm:$0xff]  ;;  %v369_v38 = vld [vmem:[#allocation4 + $0x340] sm:$0xff] }
  0x2d   :  { %469 = vmatpush.msra.mxu3 %v316_v59  ;;  %410 = vmatpush.msra.mxu0 %v267_v60  ;;  %v386_v35 = vld [vmem:[#allocation4 + $0x3c8] sm:$0xff]  ;;  %v385_v39 = vld [vmem:[#allocation4 + $0x3c0] sm:$0xff]  ;;  %v336_v40 = vld [vmem:[#allocation4 + $0x238] sm:$0xff] }
  0x2e   :  { %429 = vmatpush.msra.mxu1 %v284_v61  ;;  %450 = vmatpush.msra.mxu2 %v299_v62  ;;  %v354_v37 = vld [vmem:[#allocation4 + $0x2c8] sm:$0xff]  ;;  %v353_v41 = vld [vmem:[#allocation4 + $0x2c0] sm:$0xff]  ;;  %v368_v42 = vld [vmem:[#allocation4 + $0x338] sm:$0xff] }
  0x2f   :  { %470 = vmatpush.msra.mxu3 %v315_v63  ;;  %411 = vmatpush.msra.mxu0 %v266_v0  ;;  %v384_v43 = vld [vmem:[#allocation4 + $0x3b8] sm:$0xff]  ;;  %v335_v44 = vld [vmem:[#allocation4 + $0x230] sm:$0xff]  ;;  %v334_v48 = vld [vmem:[#allocation4 + $0x228] sm:$0xff] }
  0x30   :  { %430 = vmatpush.msra.mxu1 %v283_v1  ;;  %451 = vmatpush.msra.mxu2 %v298_v2  ;;  %v352_v45 = vld [vmem:[#allocation4 + $0x2b8] sm:$0xff]  ;;  %v367_v46 = vld [vmem:[#allocation4 + $0x330] sm:$0xff]  ;;  %v366_v50 = vld [vmem:[#allocation4 + $0x328] sm:$0xff] }
  0x31   :  { %471 = vmatpush.msra.mxu3 %v314_v3  ;;  %412 = vmatpush.msra.mxu0 %v265_v4  ;;  %v383_v47 = vld [vmem:[#allocation4 + $0x3b0] sm:$0xff]  ;;  %v382_v51 = vld [vmem:[#allocation4 + $0x3a8] sm:$0xff]  ;;  %v333_v52 = vld [vmem:[#allocation4 + $0x220] sm:$0xff] }
  0x32   :  { %431 = vmatpush.msra.mxu1 %v282_v5  ;;  %452 = vmatpush.msra.mxu2 %v297_v6  ;;  %v351_v49 = vld [vmem:[#allocation4 + $0x2b0] sm:$0xff]  ;;  %v350_v53 = vld [vmem:[#allocation4 + $0x2a8] sm:$0xff]  ;;  %v365_v54 = vld [vmem:[#allocation4 + $0x320] sm:$0xff] }
  0x33   :  { %472 = vmatpush.msra.mxu3 %v313_v7  ;;  %477 = vmatpush.msrb.mxu0 %v344_v8  ;;  %v381_v55 = vld [vmem:[#allocation4 + $0x3a0] sm:$0xff]  ;;  %v332_v56 = vld [vmem:[#allocation4 + $0x218] sm:$0xff]  ;;  %v331_v60 = vld [vmem:[#allocation4 + $0x210] sm:$0xff] }
  0x34   :  { %517 = vmatpush.msrb.mxu2 %v376_v9  ;;  %432 = vmatpush.msra.mxu1 %v281_v11  ;;  %v349_v57 = vld [vmem:[#allocation4 + $0x2a0] sm:$0xff]  ;;  %v364_v58 = vld [vmem:[#allocation4 + $0x318] sm:$0xff]  ;;  %v363_v62 = vld [vmem:[#allocation4 + $0x310] sm:$0xff] }
  0x35   :  { %537 = vmatpush.msrb.mxu3 %v392_v10  ;;  %478 = vmatpush.msrb.mxu0 %v343_v12  ;;  %v380_v59 = vld [vmem:[#allocation4 + $0x398] sm:$0xff]  ;;  %v379_v63 = vld [vmem:[#allocation4 + $0x390] sm:$0xff]  ;;  %v330_v0 = vld [vmem:[#allocation4 + $0x208] sm:$0xff] }
  0x36   :  { %497 = vmatpush.msrb.mxu1 %v360_v13  ;;  %518 = vmatpush.msrb.mxu2 %v375_v14  ;;  %v348_v61 = vld [vmem:[#allocation4 + $0x298] sm:$0xff]  ;;  %v347_v1 = vld [vmem:[#allocation4 + $0x290] sm:$0xff]  ;;  %v362_v2 = vld [vmem:[#allocation4 + $0x308] sm:$0xff] }
  0x37   :  { %538 = vmatpush.msrb.mxu3 %v391_v15  ;;  %479 = vmatpush.msrb.mxu0 %v342_v16  ;;  %v378_v3 = vld [vmem:[#allocation4 + $0x388] sm:$0xff]  ;;  %v329_v4 = vld [vmem:[#allocation4 + $0x200] sm:$0xff] }
  0x38   :  { %498 = vmatpush.msrb.mxu1 %v359_v17  ;;  %519 = vmatpush.msrb.mxu2 %v374_v18  ;;  %v346_v5 = vld [vmem:[#allocation4 + $0x288] sm:$0xff]  ;;  %v361_v6 = vld [vmem:[#allocation4 + $0x300] sm:$0xff] }
  0x39   :  { %539 = vmatpush.msrb.mxu3 %v390_v19  ;;  %480 = vmatpush.msrb.mxu0 %v341_v20  ;;  %v377_v7 = vld [vmem:[#allocation4 + $0x380] sm:$0xff] }
  0x3a   :  { %499 = vmatpush.msrb.mxu1 %v358_v21  ;;  %520 = vmatpush.msrb.mxu2 %v373_v22  ;;  %v345_v8 = vld [vmem:[#allocation4 + $0x280] sm:$0xff] }
  0x3b   :  { %540 = vmatpush.msrb.mxu3 %v389_v23  ;;  %481 = vmatpush.msrb.mxu0 %v340_v24  ;;  %v59_v9 = vld [vmem:[%s691_s2] sm:$0xff] }
  0x3c   :  { %500 = vmatpush.msrb.mxu1 %v357_v25  ;;  %521 = vmatpush.msrb.mxu2 %v372_v26  ;;  %v61_v10 = vperm.slane %v59_v9, 0  ;;  %v62_v11 = vperm.slane %v59_v9, 1  ;;  %v63_v13 = vperm.slane %v59_v9, 2  ;;  %v64_v14 = vperm.slane %v59_v9, 3 }
  0x3d   :  { %541 = vmatpush.msrb.mxu3 %v388_v27  ;;  %482 = vmatpush.msrb.mxu0 %v339_v28  ;;  %v65_v25 = vperm.slane %v59_v9, 4  ;;  %v66_v27 = vperm.slane %v59_v9, 5 }
  0x3e   :  { %501 = vmatpush.msrb.mxu1 %v356_v29  ;;  %522 = vmatpush.msrb.mxu2 %v371_v30 }
  0x3f   :  { %542 = vmatpush.msrb.mxu3 %v387_v31  ;;  %483 = vmatpush.msrb.mxu0 %v338_v32 }
  0x40   :  { %502 = vmatpush.msrb.mxu1 %v355_v33  ;;  %523 = vmatpush.msrb.mxu2 %v370_v34  ;;  %v67_v33 = vperm.slane %v59_v9, 6  ;;  %v68_v34 = vperm.slane %v59_v9, 7 }
  0x41   :  { %543 = vmatpush.msrb.mxu3 %v386_v35  ;;  %484 = vmatpush.msrb.mxu0 %v337_v36 }
  0x42   :  { %503 = vmatpush.msrb.mxu1 %v354_v37  ;;  %524 = vmatpush.msrb.mxu2 %v369_v38 }
  0x43   :  { %544 = vmatpush.msrb.mxu3 %v385_v39  ;;  %485 = vmatpush.msrb.mxu0 %v336_v40 }
  0x44   :  { %504 = vmatpush.msrb.mxu1 %v353_v41  ;;  %525 = vmatpush.msrb.mxu2 %v368_v42 }
  0x45   :  { %545 = vmatpush.msrb.mxu3 %v384_v43  ;;  %486 = vmatpush.msrb.mxu0 %v335_v44 }
  0x46   :  { %505 = vmatpush.msrb.mxu1 %v352_v45  ;;  %526 = vmatpush.msrb.mxu2 %v367_v46 }
  0x47   :  { %546 = vmatpush.msrb.mxu3 %v383_v47  ;;  %487 = vmatpush.msrb.mxu0 %v334_v48 }
  0x48   :  { %506 = vmatpush.msrb.mxu1 %v351_v49  ;;  %527 = vmatpush.msrb.mxu2 %v366_v50  ;;  %v576_v50 = vld [vmem:[%s693_s4] ss:$0 sm:$0xff] }
  0x49   :  { %547 = vmatpush.msrb.mxu3 %v382_v51  ;;  %488 = vmatpush.msrb.mxu0 %v333_v52 }
  0x4a   :  { %507 = vmatpush.msrb.mxu1 %v350_v53  ;;  %528 = vmatpush.msrb.mxu2 %v365_v54 }
  0x4b   :  { %548 = vmatpush.msrb.mxu3 %v381_v55  ;;  %489 = vmatpush.msrb.mxu0 %v332_v56 }
  0x4c   :  { %508 = vmatpush.msrb.mxu1 %v349_v57  ;;  %529 = vmatpush.msrb.mxu2 %v364_v58 }
  0x4d   :  { %549 = vmatpush.msrb.mxu3 %v380_v59  ;;  %490 = vmatpush.msrb.mxu0 %v331_v60 }
  0x4e   :  { %509 = vmatpush.msrb.mxu1 %v348_v61  ;;  %530 = vmatpush.msrb.mxu2 %v363_v62 }
  0x4f   :  { %550 = vmatpush.msrb.mxu3 %v379_v63  ;;  %491 = vmatpush.msrb.mxu0 %v330_v0 }
  0x50   :  { %510 = vmatpush.msrb.mxu1 %v347_v1  ;;  %531 = vmatpush.msrb.mxu2 %v362_v2 }
  0x51   :  { %551 = vmatpush.msrb.mxu3 %v378_v3  ;;  %492 = vmatpush.msrb.mxu0 %v329_v4 }
  0x52   :  { %511 = vmatpush.msrb.mxu1 %v346_v5  ;;  %532 = vmatpush.msrb.mxu2 %v361_v6 }
  0x53   :  { %552 = vmatpush.msrb.mxu3 %v377_v7 }
  0x54   :  { %512 = vmatpush.msrb.mxu1 %v345_v8 }
  0x8d   :  { %v98_v12 = vpop.f32.mrf.mxu0  ;;  %v118_v15 = vpop.f32.mrf.mxu1 }
  0x8e   :  { %v99_v16 = vadd.f32 %v98_v12, %v61_v10  ;;  %v119_v17 = vadd.f32 %v118_v15, %v62_v11 }
  0x90   :  { %vm241_vm1 = vcmp.ge.f32.partialorder %v99_v16, 0.0  ;;  %v249_v18 = vmul.f32 9.999999e-13, %v99_v16  ;;  %v138_v19 = vpop.f32.mrf.mxu2  ;;  %v158_v20 = vpop.f32.mrf.mxu3  ;;  %vm242_vm2 = vcmp.ge.f32.partialorder %v119_v17, 0.0  ;;  %v250_v21 = vmul.f32 9.999999e-13, %v119_v17 }
  0x91   :  { %v139_v22 = vadd.f32 %v138_v19, %v63_v13  ;;  %v159_v23 = vadd.f32 %v158_v20, %v64_v14 }
  0x92   :  { %v257_v24 = vsel %vm241_vm1, %v99_v16, %v249_v18  ;;  %v258_v26 = vsel %vm242_vm2, %v119_v17, %v250_v21 }
  0x93   :  { %vm243_vm3 = vcmp.ge.f32.partialorder %v139_v22, 0.0  ;;  %v251_v28 = vmul.f32 9.999999e-13, %v139_v22  ;;  %vm244_vm4 = vcmp.ge.f32.partialorder %v159_v23, 0.0  ;;  %v252_v29 = vmul.f32 9.999999e-13, %v159_v23  ;;  %413 = vmatmul.f32.vlgmr.msra.gmra.mxu0 %v257_v24  ;;  %433 = vmatmul.f32.vlgmr.msra.gmra.mxu1 %v258_v26 }
  0x95   :  { %v259_v30 = vsel %vm243_vm3, %v139_v22, %v251_v28  ;;  %v260_v31 = vsel %vm244_vm4, %v159_v23, %v252_v29  ;;  %v178_v32 = vpop.f32.mrf.mxu0  ;;  %v198_v35 = vpop.f32.mrf.mxu1 }
  0x96   :  { %453 = vmatmul.f32.vlgmr.msra.gmra.mxu2 %v259_v30  ;;  %473 = vmatmul.f32.vlgmr.msra.gmra.mxu3 %v260_v31  ;;  %v179_v36 = vadd.f32 %v178_v32, %v65_v25  ;;  %v199_v37 = vadd.f32 %v198_v35, %v66_v27 }
  0x98   :  { %vm245_vm5 = vcmp.ge.f32.partialorder %v179_v36, 0.0  ;;  %v253_v38 = vmul.f32 9.999999e-13, %v179_v36  ;;  %v218_v39 = vpop.f32.mrf.mxu2  ;;  %vm246_vm6 = vcmp.ge.f32.partialorder %v199_v37, 0.0  ;;  %v254_v41 = vmul.f32 9.999999e-13, %v199_v37 }
  0x99   :  { %v238_v40 = vpop.f32.mrf.mxu3  ;;  %v219_v42 = vadd.f32 %v218_v39, %v67_v33 }
  0x9a   :  { %v239_v43 = vadd.f32 %v238_v40, %v68_v34  ;;  %v261_v44 = vsel %vm245_vm5, %v179_v36, %v253_v38  ;;  %v262_v45 = vsel %vm246_vm6, %v199_v37, %v254_v41 }
  0x9b   :  { %vm247_vm7 = vcmp.ge.f32.partialorder %v219_v42, 0.0  ;;  %v255_v46 = vmul.f32 9.999999e-13, %v219_v42  ;;  %493 = vmatmul.f32.vlgmr.msrb.gmra.mxu0 %v261_v44  ;;  %513 = vmatmul.f32.vlgmr.msrb.gmra.mxu1 %v262_v45 }
  0x9c   :  { %vm248_vm8 = vcmp.ge.f32.partialorder %v239_v43, 0.0  ;;  %v256_v47 = vmul.f32 9.999999e-13, %v239_v43 }
  0x9d   :  { %v263_v48 = vsel %vm247_vm7, %v219_v42, %v255_v46 }
  0x9e   :  { %v264_v49 = vsel %vm248_vm8, %v239_v43, %v256_v47  ;;  %533 = vmatmul.f32.vlgmr.msrb.gmra.mxu2 %v263_v48 }
  0x9f   :  { %553 = vmatmul.f32.vlgmr.msrb.gmra.mxu3 %v264_v49 }
 0x110   :  { %v414_v51 = vpop.f32.mrf.mxu0  ;;  %v434_v53 = vpop.f32.mrf.mxu1 }
 0x111   :  { %v415_v52 = vadd.f32 %v576_v50, %v414_v51 }
 0x113   :  { %v435_v54 = vadd.f32 %v434_v53, %v415_v52 }
 0x118   :  { %v494_v59 = vpop.f32.mrf.mxu0  ;;  %v514_v61 = vpop.f32.mrf.mxu1 }
 0x119   :  { %v454_v55 = vpop.f32.mrf.mxu2  ;;  %v474_v56 = vpop.f32.mrf.mxu3 }
 0x11a   :  { %v455_v57 = vadd.f32 %v454_v55, %v435_v54 }
 0x11c   :  { %v475_v58 = vadd.f32 %v474_v56, %v455_v57 }
 0x11e   :  { %v495_v60 = vadd.f32 %v494_v59, %v475_v58 }
 0x120   :  { %v515_v62 = vadd.f32 %v514_v61, %v495_v60 }
 0x121   :  { %v534_v63 = vpop.f32.mrf.mxu2 }
 0x122   :  { %v535_v0 = vadd.f32 %v534_v63, %v515_v62  ;;  %v554_v1 = vpop.f32.mrf.mxu3 }
 0x124   :  { %v555_v2 = vadd.f32 %v554_v1, %v535_v0 }
 0x126   :  { %557 = vst [vmem:[%s694_s5] sm:$0xff] %v555_v2 }
 0x127   :  { %562 = vsyncpa [#allocation3], 1 }
 0x128   :  { %563 = vsyncpa [#allocation5], 1 }

</bundles_post_ra>
